<compile_context>
chip_gen: v7x
topology: tpu7x:2x2x1
jax: 0.10.0
libtpu: 0.0.40
codegen_flags: <defaults>
</compile_context>

<pallas_src>
import functools

import jax
import jax.numpy as jnp
from jax import lax
from jax.experimental import pallas as pl
from jax.experimental.pallas import tpu as pltpu


def _mlp_kernel(x_ref, w11_ref, w12_ref, w2_ref, pkd_ref, o_ref, *, W, eps):
    f32 = jnp.float32
    x = x_ref[0].astype(f32)                                  # (C, HW)  lane-dense
    C, HW = x.shape

    # Packed per-channel vectors: columns are [gamma, beta, b11, b12, b2, scale, 0, 0].
    pkd = pkd_ref[...].astype(f32)                            # (I, 8)
    gam = pkd[:C, 0:1]
    bet = pkd[:C, 1:2]
    b11 = pkd[:C, 2:3]
    b12 = pkd[:, 3:4]                                         # (I, 1)
    b2 = pkd[:C, 4:5]
    scale = pkd[:C, 5:6]

    # ---- LayerNorm (channels_first): normalize over the channel (sublane) axis
    u = jnp.mean(x, axis=0, keepdims=True)                    # (1, HW)
    xc = x - u
    var = jnp.mean(xc * xc, axis=0, keepdims=True)            # biased, as in PyTorch
    xn = xc * lax.rsqrt(var + eps)
    xn = xn * gam + bet                                       # (C, HW)

    # Column-position masks along the flattened H*W lane axis.
    col = lax.broadcasted_iota(jnp.int32, (1, HW), 1)
    at_w0 = (col % W) == 0                                    # w == 0
    at_wend = (col % W) == (W - 1)                            # w == W-1
    at_h0 = col < W                                           # h == 0
    at_hend = col >= (HW - W)                                 # h == H-1

    # ---- fc11: Conv2d(C->C, kernel=(1,3), padding=(0,1)) as ONE matmul (K = 3C).
    # pltpu.roll matches jnp.roll semantics: result[i] = x[i - shift]; boundary
    # wrap-around is masked to zero (conv zero-padding).
    x_wm1 = jnp.where(at_w0, 0.0, pltpu.roll(xn, 1, axis=1))
    x_wp1 = jnp.where(at_wend, 0.0, pltpu.roll(xn, HW - 1, axis=1))
    x_stk = jnp.concatenate([x_wm1, xn, x_wp1], axis=0)       # (3C, HW)
    y1 = jnp.dot(w11_ref[...].astype(f32), x_stk,
                 preferred_element_type=f32) + b11            # (C, HW)

    # ---- fc12: Conv2d(C->2C, kernel=(3,1), padding=(1,0)) as ONE matmul (K = 3C).
    y1_hm1 = jnp.where(at_h0, 0.0, pltpu.roll(y1, W, axis=1))
    y1_hp1 = jnp.where(at_hend, 0.0, pltpu.roll(y1, HW - W, axis=1))
    y_stk = jnp.concatenate([y1_hm1, y1, y1_hp1], axis=0)     # (3C, HW)
    y2 = jnp.dot(w12_ref[...].astype(f32), y_stk,
                 preferred_element_type=f32) + b12            # (I, HW)

    # ---- GELU
    # TODO(synk): torch.nn.GELU() defaults to the exact erf form; erf has no
    # Pallas/Mosaic lowering, so the tanh approximation is used (max abs
    # deviation ~1e-3).  The pure-JAX reference below uses the same form.
    g = jax.nn.gelu(y2, approximate=True)

    # ---- fc2 (1x1, 2C -> C), learned per-channel scale, residual
    y3 = jnp.dot(w2_ref[...].astype(f32), g,
                 preferred_element_type=f32) + b2             # (C, HW)
    o_ref[0] = (y3 * scale + x).astype(o_ref.dtype)


def mlp_forward(x, params, *, eps=1e-6):
    """MLP forward.  x: (B, C, H, W) NCHW; params in PyTorch layouts."""
    B, C, H, W = x.shape
    HW = H * W
    I = params["fc12_w"].shape[0]                # i_feats = 2 * n_feats
    f32 = jnp.float32

    # One-time, tiny parameter repacking into matmul-friendly layouts.
    # Tap-stacked weights: columns ordered [tap(-1), tap(0), tap(+1)] * C.
    w11_stk = jnp.concatenate(
        [params["fc11_w"][:, :, 0, k] for k in range(3)], axis=1)      # (C, 3C)
    w12_stk = jnp.concatenate(
        [params["fc12_w"][:, :, k, 0] for k in range(3)], axis=1)      # (I, 3C)
    w2 = params["fc2_w"][:, :, 0, 0]                                   # (C, I)

    # Packed per-channel vectors -> one (I, 8) operand (C-length ones zero-padded).
    def _pad_c(v):
        v = jnp.asarray(v, f32).reshape(-1)
        return jnp.pad(v, (0, I - v.shape[0]))
    pkd = jnp.stack(
        [_pad_c(params["ln_w"]), _pad_c(params["ln_b"]), _pad_c(params["fc11_b"]),
         jnp.asarray(params["fc12_b"], f32).reshape(-1), _pad_c(params["fc2_b"]),
         _pad_c(params["scale"]), jnp.zeros((I,), f32), jnp.zeros((I,), f32)],
        axis=1)                                                        # (I, 8)

    xf = x.reshape(B, C, HW)                     # metadata-only reshape (stays NCHW)
    kernel = functools.partial(_mlp_kernel, W=W, eps=eps)
    out = pl.pallas_call(
        kernel,
        out_shape=jax.ShapeDtypeStruct((B, C, HW), x.dtype),
        grid=(B,),
        in_specs=[
            pl.BlockSpec((1, C, HW), lambda b: (b, 0, 0)),     # x
            pl.BlockSpec((C, 3 * C), lambda b: (0, 0)),        # fc11 tap-stacked weight
            pl.BlockSpec((I, 3 * C), lambda b: (0, 0)),        # fc12 tap-stacked weight
            pl.BlockSpec((C, I), lambda b: (0, 0)),            # fc2 weight
            pl.BlockSpec((I, 8), lambda b: (0, 0)),            # packed vectors
        ],
        out_specs=pl.BlockSpec((1, C, HW), lambda b: (b, 0, 0)),
        compiler_params=pltpu.CompilerParams(
            dimension_semantics=("parallel",)),
    )(xf, w11_stk, w12_stk, w2, pkd)
    return out.reshape(B, C, H, W)


# ------------------------- pure-JAX reference (validation) ---------------------

def mlp_reference(x, params, *, eps=1e-6):
    u = jnp.mean(x, axis=1, keepdims=True)
    s = jnp.mean((x - u) ** 2, axis=1, keepdims=True)
    xn = (x - u) / jnp.sqrt(s + eps)
    xn = params["ln_w"][None, :, None, None] * xn + params["ln_b"][None, :, None, None]
    dn = ("NCHW", "OIHW", "NCHW")
    hp = lax.Precision.HIGHEST
    y1 = lax.conv_general_dilated(xn, params["fc11_w"], (1, 1), [(0, 0), (1, 1)],
                                  dimension_numbers=dn, precision=hp)
    y1 = y1 + params["fc11_b"][None, :, None, None]
    y2 = lax.conv_general_dilated(y1, params["fc12_w"], (1, 1), [(1, 1), (0, 0)],
                                  dimension_numbers=dn, precision=hp)
    y2 = y2 + params["fc12_b"][None, :, None, None]
    g = jax.nn.gelu(y2, approximate=True)        # same tanh form as the kernel
    y3 = lax.conv_general_dilated(g, params["fc2_w"], (1, 1), [(0, 0), (0, 0)],
                                  dimension_numbers=dn, precision=hp)
    y3 = y3 + params["fc2_b"][None, :, None, None]
    return y3 * params["scale"] + x


if __name__ == "__main__":
    B, C, H, W = 2, 8, 16, 16          # n_feats = 8, i_feats = 16
    I = 2 * C
    f32 = jnp.float32
    ks = jax.random.split(jax.random.PRNGKey(0), 12)
    params = {
        "ln_w":   1.0 + 0.1 * jax.random.normal(ks[0], (C,), f32),
        "ln_b":   0.1 * jax.random.normal(ks[1], (C,), f32),
        "fc11_w": 0.1 * jax.random.normal(ks[2], (C, C, 1, 3), f32),
        "fc11_b": 0.1 * jax.random.normal(ks[3], (C,), f32),
        "fc12_w": 0.1 * jax.random.normal(ks[4], (I, C, 3, 1), f32),
        "fc12_b": 0.1 * jax.random.normal(ks[5], (I,), f32),
        "fc2_w":  0.1 * jax.random.normal(ks[6], (C, I, 1, 1), f32),
        "fc2_b":  0.1 * jax.random.normal(ks[7], (C,), f32),
        # PyTorch initializes `scale` to zeros (output would equal the input);
        # random values here so the non-residual path is actually exercised.
        "scale":  0.5 * jax.random.normal(ks[8], (1, C, 1, 1), f32),
    }
    x = jax.random.normal(ks[9], (B, C, H, W), f32)

    out = mlp_forward(x, params)
    jax.block_until_ready(out)

    ref = mlp_reference(x, params)
    assert out.shape == (B, C, H, W), out.shape
    max_err = float(jnp.max(jnp.abs(out - ref)))
    assert max_err < 1e-4, f"max abs err {max_err}"
    print("KERNEL_OK")
</pallas_src>

<mosaic_0001>
module attributes {stable_mosaic.version = 11 : i64} {
  func.func @_mlp_kernel(%arg0: i32, %arg1: memref<1x8x256xf32, #tpu.memory_space<vmem>>, %arg2: memref<8x24xf32, #tpu.memory_space<vmem>>, %arg3: memref<16x24xf32, #tpu.memory_space<vmem>>, %arg4: memref<8x16xf32, #tpu.memory_space<vmem>>, %arg5: memref<16x8xf32, #tpu.memory_space<vmem>>, %arg6: memref<1x8x256xf32, #tpu.memory_space<vmem>>) attributes {dimension_semantics = [#tpu.dimension_semantics<parallel>], iteration_bounds = array<i64: 2>, scalar_prefetch = 0 : i64, scratch_operands = 0 : i64, tpu.core_type = #tpu.core_type<tc>, window_params = [{transform_indices = @transform_0, window_bounds = array<i64: 1, 8, 256>}, {pipeline_mode = #tpu.pipeline_mode<synchronous>, transform_indices = @transform_1, window_bounds = array<i64: 8, 24>}, {pipeline_mode = #tpu.pipeline_mode<synchronous>, transform_indices = @transform_2, window_bounds = array<i64: 16, 24>}, {pipeline_mode = #tpu.pipeline_mode<synchronous>, transform_indices = @transform_3, window_bounds = array<i64: 8, 16>}, {pipeline_mode = #tpu.pipeline_mode<synchronous>, transform_indices = @transform_4, window_bounds = array<i64: 16, 8>}, {transform_indices = @transform_5, window_bounds = array<i64: 1, 8, 256>}]} {
    %c0 = arith.constant 0 : index
    %c0_0 = arith.constant 0 : index
    %c0_1 = arith.constant 0 : index
    %0 = vector.load %arg1[%c0, %c0_0, %c0_1] : memref<1x8x256xf32, #tpu.memory_space<vmem>>, vector<1x8x256xf32>
    %1 = vector.shape_cast %0 : vector<1x8x256xf32> to vector<8x256xf32>
    %c0_2 = arith.constant 0 : index
    %c0_3 = arith.constant 0 : index
    %2 = vector.load %arg5[%c0_2, %c0_3] : memref<16x8xf32, #tpu.memory_space<vmem>>, vector<16x8xf32>
    %3 = vector.extract_strided_slice %2 {offsets = [0, 0], sizes = [8, 1], strides = [1, 1]} : vector<16x8xf32> to vector<8x1xf32>
    %4 = vector.extract_strided_slice %2 {offsets = [0, 1], sizes = [8, 1], strides = [1, 1]} : vector<16x8xf32> to vector<8x1xf32>
    %5 = vector.extract_strided_slice %2 {offsets = [0, 2], sizes = [8, 1], strides = [1, 1]} : vector<16x8xf32> to vector<8x1xf32>
    %6 = vector.extract_strided_slice %2 {offsets = [0, 3], sizes = [16, 1], strides = [1, 1]} : vector<16x8xf32> to vector<16x1xf32>
    %7 = vector.extract_strided_slice %2 {offsets = [0, 4], sizes = [8, 1], strides = [1, 1]} : vector<16x8xf32> to vector<8x1xf32>
    %8 = vector.extract_strided_slice %2 {offsets = [0, 5], sizes = [8, 1], strides = [1, 1]} : vector<16x8xf32> to vector<8x1xf32>
    %cst = arith.constant dense<0.000000e+00> : vector<256xf32>
    %9 = vector.multi_reduction <add>, %1, %cst [0] : vector<8x256xf32> to vector<256xf32>
    %10 = vector.shape_cast %9 : vector<256xf32> to vector<1x256xf32>
    %cst_4 = arith.constant 8.000000e+00 : f32
    %11 = vector.broadcast %cst_4 : f32 to vector<1x256xf32>
    %12 = arith.divf %10, %11 : vector<1x256xf32>
    %13 = vector.broadcast %12 : vector<1x256xf32> to vector<8x256xf32>
    %14 = arith.subf %1, %13 : vector<8x256xf32>
    %15 = arith.mulf %14, %14 : vector<8x256xf32>
    %cst_5 = arith.constant dense<0.000000e+00> : vector<256xf32>
    %16 = vector.multi_reduction <add>, %15, %cst_5 [0] : vector<8x256xf32> to vector<256xf32>
    %17 = vector.shape_cast %16 : vector<256xf32> to vector<1x256xf32>
    %cst_6 = arith.constant 8.000000e+00 : f32
    %18 = vector.broadcast %cst_6 : f32 to vector<1x256xf32>
    %19 = arith.divf %17, %18 : vector<1x256xf32>
    %cst_7 = arith.constant 9.99999997E-7 : f32
    %20 = vector.broadcast %cst_7 : f32 to vector<1x256xf32>
    %21 = arith.addf %19, %20 : vector<1x256xf32>
    %22 = math.rsqrt %21 : vector<1x256xf32>
    %23 = vector.broadcast %22 : vector<1x256xf32> to vector<8x256xf32>
    %24 = arith.mulf %14, %23 : vector<8x256xf32>
    %25 = vector.broadcast %3 : vector<8x1xf32> to vector<8x256xf32>
    %26 = arith.mulf %24, %25 : vector<8x256xf32>
    %27 = vector.broadcast %4 : vector<8x1xf32> to vector<8x256xf32>
    %28 = arith.addf %26, %27 : vector<8x256xf32>
    %29 = tpu.iota {dimensions = array<i32: 1>} : vector<1x256xi32>
    %c16_i32 = arith.constant 16 : i32
    %c0_i32 = arith.constant 0 : i32
    %30 = arith.cmpi eq, %c16_i32, %c0_i32 : i32
    %c1_i32 = arith.constant 1 : i32
    %31 = arith.select %30, %c1_i32, %c16_i32 : i32
    %32 = vector.broadcast %31 : i32 to vector<1x256xi32>
    %33 = arith.remsi %29, %32 : vector<1x256xi32>
    %c0_i32_8 = arith.constant 0 : i32
    %34 = vector.broadcast %c0_i32_8 : i32 to vector<1x256xi32>
    %35 = arith.cmpi ne, %33, %34 : vector<1x256xi32>
    %c0_i32_9 = arith.constant 0 : i32
    %36 = vector.broadcast %c0_i32_9 : i32 to vector<1x256xi32>
    %37 = arith.cmpi slt, %33, %36 : vector<1x256xi32>
    %c0_i32_10 = arith.constant 0 : i32
    %38 = arith.cmpi slt, %31, %c0_i32_10 : i32
    %39 = vector.broadcast %38 : i1 to vector<1x256xi1>
    %40 = vector.broadcast %39 : vector<1x256xi1> to vector<1x256xi1>
    %41 = arith.xori %37, %40 : vector<1x256xi1>
    %42 = arith.andi %41, %35 : vector<1x256xi1>
    %43 = vector.broadcast %31 : i32 to vector<1x256xi32>
    %44 = arith.addi %33, %43 : vector<1x256xi32>
    %45 = arith.select %42, %44, %33 : vector<1x256xi1>, vector<1x256xi32>
    %c0_i32_11 = arith.constant 0 : i32
    %46 = vector.broadcast %c0_i32_11 : i32 to vector<1x256xi32>
    %47 = arith.cmpi eq, %45, %46 : vector<1x256xi32>
    %c16_i32_12 = arith.constant 16 : i32
    %c0_i32_13 = arith.constant 0 : i32
    %48 = arith.cmpi eq, %c16_i32_12, %c0_i32_13 : i32
    %c1_i32_14 = arith.constant 1 : i32
    %49 = arith.select %48, %c1_i32_14, %c16_i32_12 : i32
    %50 = vector.broadcast %49 : i32 to vector<1x256xi32>
    %51 = arith.remsi %29, %50 : vector<1x256xi32>
    %c0_i32_15 = arith.constant 0 : i32
    %52 = vector.broadcast %c0_i32_15 : i32 to vector<1x256xi32>
    %53 = arith.cmpi ne, %51, %52 : vector<1x256xi32>
    %c0_i32_16 = arith.constant 0 : i32
    %54 = vector.broadcast %c0_i32_16 : i32 to vector<1x256xi32>
    %55 = arith.cmpi slt, %51, %54 : vector<1x256xi32>
    %c0_i32_17 = arith.constant 0 : i32
    %56 = arith.cmpi slt, %49, %c0_i32_17 : i32
    %57 = vector.broadcast %56 : i1 to vector<1x256xi1>
    %58 = vector.broadcast %57 : vector<1x256xi1> to vector<1x256xi1>
    %59 = arith.xori %55, %58 : vector<1x256xi1>
    %60 = arith.andi %59, %53 : vector<1x256xi1>
    %61 = vector.broadcast %49 : i32 to vector<1x256xi32>
    %62 = arith.addi %51, %61 : vector<1x256xi32>
    %63 = arith.select %60, %62, %51 : vector<1x256xi1>, vector<1x256xi32>
    %c15_i32 = arith.constant 15 : i32
    %64 = vector.broadcast %c15_i32 : i32 to vector<1x256xi32>
    %65 = arith.cmpi eq, %63, %64 : vector<1x256xi32>
    %c16_i32_18 = arith.constant 16 : i32
    %66 = vector.broadcast %c16_i32_18 : i32 to vector<1x256xi32>
    %67 = arith.cmpi slt, %29, %66 : vector<1x256xi32>
    %c240_i32 = arith.constant 240 : i32
    %68 = vector.broadcast %c240_i32 : i32 to vector<1x256xi32>
    %69 = arith.cmpi sge, %29, %68 : vector<1x256xi32>
    %c1_i32_19 = arith.constant 1 : i32
    %70 = tpu.dynamic_rotate %28 by %c1_i32_19 dim 1 : vector<8x256xf32>, i32 -> vector<8x256xf32>
    %cst_20 = arith.constant 0.000000e+00 : f32
    %71 = vector.shape_cast %47 : vector<1x256xi1> to vector<1x256xi1>
    %72 = vector.broadcast %71 : vector<1x256xi1> to vector<8x256xi1>
    %73 = vector.broadcast %cst_20 : f32 to vector<8x256xf32>
    %74 = arith.select %72, %73, %70 : vector<8x256xi1>, vector<8x256xf32>
    %c255_i32 = arith.constant 255 : i32
    %75 = tpu.dynamic_rotate %28 by %c255_i32 dim 1 : vector<8x256xf32>, i32 -> vector<8x256xf32>
    %cst_21 = arith.constant 0.000000e+00 : f32
    %76 = vector.shape_cast %65 : vector<1x256xi1> to vector<1x256xi1>
    %77 = vector.broadcast %76 : vector<1x256xi1> to vector<8x256xi1>
    %78 = vector.broadcast %cst_21 : f32 to vector<8x256xf32>
    %79 = arith.select %77, %78, %75 : vector<8x256xi1>, vector<8x256xf32>
    %80 = tpu.concatenate %74, %28, %79 in 0 : vector<8x256xf32>, vector<8x256xf32>, vector<8x256xf32> -> vector<24x256xf32>
    %c0_22 = arith.constant 0 : index
    %c0_23 = arith.constant 0 : index
    %81 = vector.load %arg2[%c0_22, %c0_23] : memref<8x24xf32, #tpu.memory_space<vmem>>, vector<8x24xf32>
    %cst_24 = arith.constant dense<0.000000e+00> : vector<8x256xf32>
    %82 = tpu.matmul %81, %80, %cst_24 {dimension_numbers = #tpu.dot_dimension_numbers<[1], [0], [0], [1], [0, 0, 1, 1], [], []>} : vector<8x24xf32>, vector<24x256xf32>, vector<8x256xf32> -> vector<8x256xf32>
    %83 = vector.broadcast %5 : vector<8x1xf32> to vector<8x256xf32>
    %84 = arith.addf %82, %83 : vector<8x256xf32>
    %c16_i32_25 = arith.constant 16 : i32
    %85 = tpu.dynamic_rotate %84 by %c16_i32_25 dim 1 : vector<8x256xf32>, i32 -> vector<8x256xf32>
    %cst_26 = arith.constant 0.000000e+00 : f32
    %86 = vector.shape_cast %67 : vector<1x256xi1> to vector<1x256xi1>
    %87 = vector.broadcast %86 : vector<1x256xi1> to vector<8x256xi1>
    %88 = vector.broadcast %cst_26 : f32 to vector<8x256xf32>
    %89 = arith.select %87, %88, %85 : vector<8x256xi1>, vector<8x256xf32>
    %c240_i32_27 = arith.constant 240 : i32
    %90 = tpu.dynamic_rotate %84 by %c240_i32_27 dim 1 : vector<8x256xf32>, i32 -> vector<8x256xf32>
    %cst_28 = arith.constant 0.000000e+00 : f32
    %91 = vector.shape_cast %69 : vector<1x256xi1> to vector<1x256xi1>
    %92 = vector.broadcast %91 : vector<1x256xi1> to vector<8x256xi1>
    %93 = vector.broadcast %cst_28 : f32 to vector<8x256xf32>
    %94 = arith.select %92, %93, %90 : vector<8x256xi1>, vector<8x256xf32>
    %95 = tpu.concatenate %89, %84, %94 in 0 : vector<8x256xf32>, vector<8x256xf32>, vector<8x256xf32> -> vector<24x256xf32>
    %c0_29 = arith.constant 0 : index
    %c0_30 = arith.constant 0 : index
    %96 = vector.load %arg3[%c0_29, %c0_30] : memref<16x24xf32, #tpu.memory_space<vmem>>, vector<16x24xf32>
    %cst_31 = arith.constant dense<0.000000e+00> : vector<16x256xf32>
    %97 = tpu.matmul %96, %95, %cst_31 {dimension_numbers = #tpu.dot_dimension_numbers<[1], [0], [0], [1], [0, 0, 1, 1], [], []>} : vector<16x24xf32>, vector<24x256xf32>, vector<16x256xf32> -> vector<16x256xf32>
    %98 = vector.broadcast %6 : vector<16x1xf32> to vector<16x256xf32>
    %99 = arith.addf %97, %98 : vector<16x256xf32>
    %100 = arith.mulf %99, %99 : vector<16x256xf32>
    %101 = arith.mulf %99, %100 : vector<16x256xf32>
    %cst_32 = arith.constant 4.471500e-02 : f32
    %102 = vector.broadcast %cst_32 : f32 to vector<16x256xf32>
    %103 = arith.mulf %102, %101 : vector<16x256xf32>
    %104 = arith.addf %99, %103 : vector<16x256xf32>
    %cst_33 = arith.constant 0.797884583 : f32
    %105 = vector.broadcast %cst_33 : f32 to vector<16x256xf32>
    %106 = arith.mulf %105, %104 : vector<16x256xf32>
    %107 = math.tanh %106 : vector<16x256xf32>
    %cst_34 = arith.constant 1.000000e+00 : f32
    %108 = vector.broadcast %cst_34 : f32 to vector<16x256xf32>
    %109 = arith.addf %108, %107 : vector<16x256xf32>
    %cst_35 = arith.constant 5.000000e-01 : f32
    %110 = vector.broadcast %cst_35 : f32 to vector<16x256xf32>
    %111 = arith.mulf %110, %109 : vector<16x256xf32>
    %112 = arith.mulf %99, %111 : vector<16x256xf32>
    %c0_36 = arith.constant 0 : index
    %c0_37 = arith.constant 0 : index
    %113 = vector.load %arg4[%c0_36, %c0_37] : memref<8x16xf32, #tpu.memory_space<vmem>>, vector<8x16xf32>
    %cst_38 = arith.constant dense<0.000000e+00> : vector<8x256xf32>
    %114 = tpu.matmul %113, %112, %cst_38 {dimension_numbers = #tpu.dot_dimension_numbers<[1], [0], [0], [1], [0, 0, 1, 1], [], []>} : vector<8x16xf32>, vector<16x256xf32>, vector<8x256xf32> -> vector<8x256xf32>
    %115 = vector.broadcast %7 : vector<8x1xf32> to vector<8x256xf32>
    %116 = arith.addf %114, %115 : vector<8x256xf32>
    %117 = vector.broadcast %8 : vector<8x1xf32> to vector<8x256xf32>
    %118 = arith.mulf %116, %117 : vector<8x256xf32>
    %119 = arith.addf %118, %1 : vector<8x256xf32>
    %c0_39 = arith.constant 0 : index
    %c0_40 = arith.constant 0 : index
    %c0_41 = arith.constant 0 : index
    %120 = vector.load %arg6[%c0_39, %c0_40, %c0_41] : memref<1x8x256xf32, #tpu.memory_space<vmem>>, vector<1x8x256xf32>
    %121 = vector.shape_cast %120 : vector<1x8x256xf32> to vector<8x256xf32>
    %122 = vector.shape_cast %119 : vector<8x256xf32> to vector<1x8x256xf32>
    tpu.vector_store %arg6[%c0_39, %c0_40, %c0_41], %122 {strides = array<i32>} : memref<1x8x256xf32, #tpu.memory_space<vmem>>, vector<1x8x256xf32>,
    return
  }
  func.func @transform_0(%arg0: i32) -> (i32, i32, i32) {
    %c0_i32 = arith.constant 0 : i32
    %c0_i32_0 = arith.constant 0 : i32
    %c0_i32_1 = arith.constant 0 : i32
    return %arg0, %c0_i32, %c0_i32_0 : i32, i32, i32
  }
  func.func @transform_1(%arg0: i32) -> (i32, i32) {
    %c0_i32 = arith.constant 0 : i32
    %c0_i32_0 = arith.constant 0 : i32
    %c0_i32_1 = arith.constant 0 : i32
    return %c0_i32, %c0_i32_0 : i32, i32
  }
  func.func @transform_2(%arg0: i32) -> (i32, i32) {
    %c0_i32 = arith.constant 0 : i32
    %c0_i32_0 = arith.constant 0 : i32
    %c0_i32_1 = arith.constant 0 : i32
    return %c0_i32, %c0_i32_0 : i32, i32
  }
  func.func @transform_3(%arg0: i32) -> (i32, i32) {
    %c0_i32 = arith.constant 0 : i32
    %c0_i32_0 = arith.constant 0 : i32
    %c0_i32_1 = arith.constant 0 : i32
    return %c0_i32, %c0_i32_0 : i32, i32
  }
  func.func @transform_4(%arg0: i32) -> (i32, i32) {
    %c0_i32 = arith.constant 0 : i32
    %c0_i32_0 = arith.constant 0 : i32
    %c0_i32_1 = arith.constant 0 : i32
    return %c0_i32, %c0_i32_0 : i32, i32
  }
  func.func @transform_5(%arg0: i32) -> (i32, i32, i32) {
    %c0_i32 = arith.constant 0 : i32
    %c0_i32_0 = arith.constant 0 : i32
    %c0_i32_1 = arith.constant 0 : i32
    return %arg0, %c0_i32, %c0_i32_0 : i32, i32, i32
  }
}

</mosaic_0001>

<bundles_post_ra>
// kernel: tpu_custom_call.1
= control target key start
LH: loop header
LB: loop body
LE: loop exit
PB: predicated region body
PF: predicated region fallthrough
CT: control target
= control target key end

     0   :  { %10 = vsyncpa [#allocation3], 0  ;;  %s1275_s0 = inlined_call_operand.hbm [shape: f32[2,8,256], index: 0, kind: input, shape index: {}]   ;;  %s1276_s1 = inlined_call_operand.vmem [shape: f32[8,24], index: 1, kind: input, shape index: {}]   ;;  %s1277_s2 = inlined_call_operand.vmem [shape: f32[16,24], index: 2, kind: input, shape index: {}]   ;;  %s1278_s3 = inlined_call_operand.vmem [shape: f32[8,16], index: 3, kind: input, shape index: {}]   ;;  %s1279_s4 = inlined_call_operand.vmem [shape: f32[16,8], index: 4, kind: input, shape index: {}]   ;;  %s1280_s5 = inlined_call_operand.hbm [shape: f32[2,8,256], index: 5, kind: output, shape index: {}]  }
   0x1   :  { %12 = vsyncpa [#allocation3 + $0x1], 0 }
   0x2   :  { %13 = vsyncpa [#allocation4], 0 }
   0x3   :  { %15 = vsyncpa [#allocation4 + $0x1], 0  ;;  %s1050_s18 = smov 0   ;;  %s1052_s19 = smov 0  }
   0x4   :  { %s1054_s20 = smov 0   ;;  %s1056_s21 = smov 0  }
   0x5 LB: > { %s1071_s22 = sadd.s32 4294967295, %s1004_s21   ;;  %s768_s23 = sadd.s32 4294967294, %s1004_s21   ;;  %s1004_s21 = sphi %s1056_s21, %s1295_s21   ;;  %s1000_s20 = sphi %s1054_s20, %s1294_s20   ;;  %s996_s19 = sphi %s1052_s19, %s1293_s19   ;;  %s992_s18 = sphi %s1050_s18, %s1292_s18  }
   0x6   : > { %s1075_s24 = sadd.s32 1, %s1004_s21   ;;  %s28_s25 = sadd.s32 1, %s1000_s20 }
   0x7   : > { %s25_s26 = ssub.s32 %s1004_s21, %s1075_s24  ;;  %p35_p0 = scmp.ne.s32.totalorder %s1000_s20, %s996_s19 }
   0x8   : > { %p26_p1 = scmp.eq.s32.totalorder %s25_s26, 0  ;;  %p36_p2 = scmp.eq.s32.totalorder %s1004_s21, 0 }
   0x9   : > { %p41_p3 = scmp.ne.s32.totalorder %s996_s19, %s992_s18  ;;  %p42_p4 = scmp.eq.s32.totalorder %s1071_s22, 0 }
   0xa   : > { %s1087_s27 = scalar_select %p26_p1, %s1000_s20, %s28_s25  }
   0xb   : > { %p1089_p5 = por %p36_p2, %p35_p0  ;;  %p1093_p6 = por %p42_p4, %p41_p3 }
   0xc   : > { %p149_p7 = scmp.eq.s32.totalorder %s1071_s22, 1  ;;  %p155_p8 = scmp.eq.s32.totalorder %s768_s23, 1 }
   0xd   : > { %p832_p10 = scmp.lt.s32.totalorder %s1004_s21, 2  ;;  %s187_s7 = sand.u32 1, %s1000_s20  }
   0xe   : > { %p1100_p11 = por %p149_p7, %p35_p0  ;;  %p1104_p12 = por %p155_p8, %p41_p3 }
   0xf   : > { %s798_s8 = sshll.u32 %s1004_s21, 8  ;;  %s771_s9 = sshll.u32 %s187_s7, 4 }
  0x10   : > { %s1284_s30 = scalar_select %p1100_p11, 1, 0 }
  0x11   : > { %s1285_s6 = scalar_select %p1104_p12, 1, 0 }
  0x12   : > { %s1113_s12 = scalar_lea.hbm %s1275_s0, %s798_s8  ;;  %s191_s13 = scalar_lea.vmem [#allocation2], %s771_s9 }
  0x13   : > { %s199_s14 = sshll.u32 %s191_s13, 4  ;;  %p1117_p13 = pnand %p832_p10, %p1089_p5  ;;  %s1121_s14 = int_to_ptr.vmem [resolvable:$true] %s199_s14 }
  0x14   : > { %s188_s16 = scalar_lea.sflag [#allocation3], %s187_s7  ;;  %s908_s17 = scalar_lea.hbm %s1113_s12, 256 }
  0x15   : > { %p909_p2 = scmp.ne.s32.totalorder %s1113_s12, %s908_s17  ;;  %p910_p3 = pneg %p1117_p13 }
  0x16   : > { %s913_s26 = scalar_lea.hbm %s1275_s0, 512  ;;  %p914_p5 = scmp.lt.u32.totalorder %s1113_s12, %s1275_s0 }
  0x17   : > { %p911_p4 = pnand %p910_p3, %p909_p2  ;;  %p915_p8 = scmp.lt.u32.totalorder %s913_s26, %s908_s17 }
  0x18   : > { %p917_p9 = scmp.lt.u32.totalorder %s908_s17, %s1113_s12 }
  0x19   : > { %p912_p7 = pneg %p911_p4  ;;  %p916_p10 = por %p915_p8, %p914_p5 }
  0x1b   : > { %p918_p0 = por %p917_p9, %p916_p10 }
  0x1d   : > { %p919_p1 = pnand %p918_p0, %p912_p7 }
  0x1f   : > { %922 = shalt.err (!%p919_p1)
}
  0x20   : > { %s923_s7 = scalar_lea.vmem %s1121_s14, 256  ;;  %s1006_s9 = smov [#allocation2]  }
  0x21   : > { %p924_p2 = scmp.ne.s32.totalorder %s1121_s14, %s923_s7  ;;  %s928_s10 = sshll.u32 %s1006_s9, 4  ;;  %s929_s10 = int_to_ptr.vmem [resolvable:$false] %s928_s10 }
  0x22   : > { %s930_s11 = scalar_lea.vmem %s929_s10, 512  ;;  %p931_p11 = scmp.lt.s32.totalorder %s1121_s14, %s929_s10 }
  0x23   : > { %p926_p4 = pnand %p924_p2, %p910_p3  ;;  %p932_p5 = scmp.lt.s32.totalorder %s930_s11, %s923_s7 }
  0x25   : > { %p927_p12 = pneg %p926_p4  ;;  %p933_p8 = por %p932_p5, %p931_p11 }
  0x27   : > { %p934_p9 = pnand %p933_p8, %p927_p12 }
  0x29   : > { %937 = shalt.err (!%p934_p9)
}
  0x2a   : > { %827 = dma.hbm_to_vmem [thread:$0]  (!%p1117_p13), %s1113_s12, 256, %s1121_s14, %s188_s16  }
  0x2b   : > { %p1287_p0 = scmp.lt.s32.totalorder %s1004_s21, 3  ;;  %p1288_p1 = scmp.ge.s32.totalorder %s1004_s21, 1 }
  0x2d   : > { %p205_p3 = pnand %p1288_p1, %p1287_p0 }
  0x2e   : > { %s1155_s13 = sand.u32 (!%p205_p3), 1, %s996_s19  }
  0x2f   : > { %208 = sbr.rel (%p205_p3) target bundleno = 1148 (0x47c), region = 40  ;;  %s775_s17 = sshll.u32 (!%p205_p3), %s1155_s13, 4 }
  0x30   : > { %s211_s23 = scalar_lea.sflag (!%p205_p3), [#allocation3], %s1155_s13  ;;  %s214_s15 = scalar_lea.vmem (!%p205_p3), [#allocation2], %s775_s17 }
  0x36   : > { %983 = dma.done.wait (%p1093_p6), %s211_s23, 256  }
  0x37   : > { %985 = vsyncadd (%p1093_p6), %s211_s23, 4294967040  ;;  %v1007_v0 = vmov 0   ;;  %v1168_v1 = vld [vmem:[%s1279_s4] sm:$0xff]  ;;  %v1008_v2 = vmov 1   ;;  %v1174_v4 = vld [vmem:[%s214_s15 + $0x8] sm:$0xff]  ;;  %v1009_v49 = vmov 0.0   ;;  %v297_v52 = vlaneseq }
  0x38   : > { %878 = vset.pattern.permute.xlu0 %v1007_v0  ;;  %v1172_v3 = vld [vmem:[%s214_s15] sm:$0xff]  ;;  %v251_v6 = vrot.slane %v1174_v4, 4  ;;  %431 = vmatprep.mubr.f32.mxu0 %v1009_v49  ;;  %v1010_v51 = vmov 2   ;;  %s1011_s29 = smov 1   ;;  %s1012_s16 = smov 127   ;;  %vm1013_vm3 = vmmov 1  }
  0x39   : > { %286 = vperm.xlu0 %878, %v1168_v1   ;;  %v245_v5 = vrot.slane %v1172_v3, 4  ;;  %544 = vmatprep.mubr.f32.mxu1 %v1009_v49  ;;  %v1185_v53 = vand.u32 127, %v297_v52  ;;  %vm363_vm9 = vcmask 195584   ;;  %s1014_s28 = smov 112   ;;  %s1015_s8 = smov 16   ;;  %vm598_vm15 = vcmask 130048  }
  0x3a   : > { %v252_v8 = vadd.f32 %v251_v6, %v1174_v4  ;;  %p1289_p11 = scmp.ne.s32.totalorder %s1284_s30, 0  ;;  %s1019_s7 = smov [#allocation5]  }
  0x3b   : > { %v246_v7 = vadd.f32 %v245_v5, %v1172_v3  ;;  %v1188_v54 = vadd.s32 128, %v1185_v53  ;;  %v304_v56 = vand.u32 15, %v1185_v53  ;;  %vm336_vm0 = vcmp.lt.s32.totalorder %v1185_v53, 1  ;;  %s942_s9 = sshll.u32 %s1019_s7, 4  ;;  %s943_s9 = int_to_ptr.vmem [resolvable:$false] %s942_s9 }
  0x3c   : > { %v253_v10 = vrot.slane %v252_v8, 2  ;;  %vm349_vm6 = vcmp.lt.s32.totalorder %v1185_v53, 127  ;;  %vm328_vm10 = vcmp.lt.s32.totalorder %v1185_v53, 16  ;;  %vm454_vm12 = vcmp.lt.s32.totalorder %v1185_v53, 112  ;;  %s944_s10 = scalar_lea.vmem %s943_s9, 512 }
  0x3d   : > { %879 = vset.pattern.permute.xlu0 %v1008_v2  ;;  %v247_v9 = vrot.slane %v246_v7, 2  ;;  %v311_v55 = vand.u32 15, %v1188_v54  ;;  %vm801_vm2 = vcmp.ne.s32.totalorder %v304_v56, 0  ;;  %vm803_vm8 = vcmp.ne.s32.totalorder %v304_v56, 15  ;;  %vm786_vm11 = vmneg %vm328_vm10 }
  0x3e   : > { %292 = vperm.xlu0 %879, %v1168_v1   ;;  %v254_v12 = vadd.f32 %v253_v10, %v252_v8  ;;  %vm809_vm5 = vmpackc.low %vm1013_vm3, %vm801_vm2  ;;  %vm804_vm14 = vcmp.lt.s32.totalorder %v1188_v54, 240 }
  0x3f   : > { %v248_v11 = vadd.f32 %v247_v9, %v246_v7  ;;  %vm800_vm1 = vcmp.ne.s32.totalorder %v311_v55, 0  ;;  %vm802_vm7 = vcmp.ne.s32.totalorder %v311_v55, 15  ;;  %v358_v7 = vld [vmem:[%s1276_s1] sm:$0xff]  ;;  %vm814_vm13 = vmpackc.low %vm1013_vm3, %vm786_vm11 }
  0x40   : > { %v255_v14 = vrot.slane %v254_v12, 1  ;;  %vm806_vm4 = vmpackc.low %vm1013_vm3, %vm800_vm1 }
  0x41   : > { %v249_v13 = vrot.slane %v248_v11, 1 }
  0x42   : > { %v256_v16 = vadd.f32 %v255_v14, %v254_v12  ;;  %885 = vset.pattern.permute.xlu0 %v1010_v51  ;;  %v244_v14 = vld [vmem:[%s1279_s4 + $0x8] sm:$0xff] }
  0x43   : > { %v250_v15 = vadd.f32 %v249_v13, %v248_v11  ;;  %360 = vperm.xlu0 %885, %v1168_v1  }
  0x44   : > { %v259_v18 = vmul.f32 0.125, %v256_v16 }
  0x45   : > { %v258_v17 = vmul.f32 0.125, %v250_v15  ;;  %v1016_v15 = vmov 3  }
  0x46   : > { %v261_v20 = vsub.f32 %v1174_v4, %v259_v18  ;;  %891 = vset.pattern.permute.xlu1 %v1016_v15 }
  0x47   : > { %v260_v19 = vsub.f32 %v1172_v3, %v258_v17  ;;  %892 = vset.pattern.permute.xlu0 %v1016_v15 }
  0x48   : > { %v263_v22 = vmul.f32 %v261_v20, %v261_v20 }
  0x49   : > { %v262_v21 = vmul.f32 %v260_v19, %v260_v19 }
  0x4a   : > { %v270_v24 = vrot.slane %v263_v22, 4 }
  0x4b   : > { %v264_v23 = vrot.slane %v262_v21, 4 }
  0x4c   : > { %v271_v26 = vadd.f32 %v270_v24, %v263_v22 }
  0x4d   : > { %v265_v25 = vadd.f32 %v264_v23, %v262_v21 }
  0x4e   : > { %v272_v28 = vrot.slane %v271_v26, 2 }
  0x4f   : > { %v266_v27 = vrot.slane %v265_v25, 2 }
  0x50   : > { %v273_v30 = vadd.f32 %v272_v28, %v271_v26  ;;  %v463_v26 = vld [vmem:[%s1277_s2] sm:$0xff]  ;;  %v464_v28 = vld [vmem:[%s1277_s2 + $0x8] sm:$0xff] }
  0x51   : > { %v267_v29 = vadd.f32 %v266_v27, %v265_v25 }
  0x52   : > { %v274_v32 = vrot.slane %v273_v30, 1 }
  0x53   : > { %v268_v31 = vrot.slane %v267_v29, 1 }
  0x54   : > { %v275_v34 = vadd.f32 %v274_v32, %v273_v30  ;;  %v1018_v30 = vmov 5  }
  0x55   : > { %v269_v33 = vadd.f32 %v268_v31, %v267_v29  ;;  %v1017_v29 = vmov 4  }
  0x56   : > { %v277_v36 = vmul.f32 0.125, %v275_v34 }
  0x57   : > { %v276_v35 = vmul.f32 0.125, %v269_v33 }
  0x58   : > { %v279_v38 = vadd.f32 1e-06, %v277_v36 }
  0x59   : > { %v278_v37 = vadd.f32 1e-06, %v276_v35 }
  0x5b   : > { %896 = vrsqrt.f32 %v278_v37 }
  0x5c   : > { %898 = vrsqrt.f32 %v279_v38 }
  0x65   : > { %v897_v39 = vpop.eup %896 }
  0x66   : > { %v899_v40 = vpop.eup %898  ;;  %v282_v42 = vmul.f32 %v897_v39, %v260_v19 }
  0x67   : > { %v283_v43 = vmul.f32 %v899_v40, %v261_v20 }
  0xb8   : > { %v287_v41 = vpop.permute.xlu0 %286 }
  0xb9   : > { %v289_v44 = vmul.f32 %v287_v41, %v282_v42  ;;  %v290_v45 = vmul.f32 %v287_v41, %v283_v43 }
  0xbd   : > { %v293_v46 = vpop.permute.xlu0 %292 }
  0xbe   : > { %v295_v47 = vadd.f32 %v293_v46, %v289_v44  ;;  %v296_v48 = vadd.f32 %v293_v46, %v290_v45 }
  0xc0   : > { %v880_v50 = vpack.i.bf16 %v296_v48, %v295_v47 }
  0xc2   : > { %881 = vrot.lane.b32.xlu1 %v880_v50, %s1011_s29  ;;  %v361_v8 = vpop.permute.xlu0 %360  ;;  %s799_s29 = sshll.u32 %s1071_s22, 8  ;;  %s684_s22 = scalar_lea.sflag [#allocation4], %s1155_s13 }
  0xc6   : > { %345 = vrot.lane.b32.xlu1 %v295_v47, %s1012_s16 }
  0xca   : > { %347 = vrot.lane.b32.xlu1 %v296_v48, %s1012_s16  ;;  %s240_s16 = scalar_lea.vmem [#allocation5], %s775_s17 }
  0xcb   : > { %s698_s25 = sshll.u32 %s240_s16, 4  ;;  %s1233_s25 = int_to_ptr.vmem [resolvable:$true] %s698_s25 }
  0xcc   : > { %s938_s17 = scalar_lea.vmem %s1233_s25, 256  ;;  %p945_p7 = scmp.lt.s32.totalorder %s1233_s25, %s943_s9 }
  0xcd   : > { %p939_p6 = scmp.ne.s32.totalorder %s1233_s25, %s938_s17  ;;  %p946_p10 = scmp.lt.s32.totalorder %s944_s10, %s938_s17 }
  0xcf   : > { %p940_p12 = pnand %p939_p6, %p1289_p11  ;;  %p947_p2 = por %p946_p10, %p945_p7 }
  0xd1   : > { %p941_p13 = pneg %p940_p12 }
  0xd3   : > { %p948_p4 = pnand %p947_p2, %p941_p13 }
 0x134   : > { %v882_v57 = vpop.permute.xlu1 %881 }
 0x135   : > { %v884_v58 = vunpack.i.h.bf16 %v882_v57  ;;  %v883_v59 = vunpack.i.l.bf16 %v882_v57 }
 0x137   : > { %v337_v60 = vsel %vm336_vm0, %v883_v59, %v884_v58  ;;  %v338_v61 = vsel %vm336_vm0, %v884_v58, %v883_v59 }
 0x138   : > { %v346_v62 = vpop.permute.xlu1 %345  ;;  %v805_v63 = vpack.c.bf16 %v296_v48, %v337_v60  ;;  %v808_v0 = vpack.c.bf16 %v295_v47, %v338_v61 }
 0x13a   : > { %807 = vmatprep.subr.msk.bf16.mxu0 %vm806_vm4, %v805_v63 }
 0x13b   : > { %810 = vmatpush1.bf16.msk.msra.mxu0 %vm809_vm5, %v808_v0 }
 0x13c   : > { %v348_v2 = vpop.permute.xlu1 %347 }
 0x13d   : > { %v350_v5 = vsel %vm349_vm6, %v346_v62, %v348_v2  ;;  %v351_v6 = vsel %vm349_vm6, %v348_v2, %v346_v62 }
 0x13e   : > { %782 = vmatprep.subr.msk.mxu0 %vm802_vm7, %v351_v6 }
 0x13f   : > { %784 = vmatpush1.msk.msra.mxu0 %vm803_vm8, %v350_v5 }
 0x140   : > { %785 = vmatmul.mubr.msk.f32.vlgmr.msra.gmra.mrb[0].mxu0 %vm363_vm9, %v358_v7 }
 0x141   : > { %666 = vmatprep.mubr.f32.mxu0 %v1009_v49 }
 0x213   : > { %v433_v9 = vpop.f32.mrb[0].mxu0 }
 0x214   : > { %v434_v10 = vadd.f32 %v433_v9, %v361_v8  ;;  %v435_v11 = vpop.f32.mrb[1].mxu0 }
 0x215   : > { %v436_v12 = vadd.f32 %v435_v11, %v361_v8 }
 0x217   : > { %452 = vrot.lane.b32.xlu0 %v436_v12, %s1014_s28  ;;  %v886_v13 = vpack.i.bf16 %v436_v12, %v434_v10 }
 0x219   : > { %887 = vrot.lane.b32.xlu1 %v886_v13, %s1015_s8  ;;  %s1231_s8 = scalar_lea.hbm %s1280_s5, %s799_s29 }
 0x21b   : > { %471 = vperm.xlu0 %892, %v244_v14  }
 0x21d   : > { %450 = vrot.lane.b32.xlu1 %v434_v10, %s1014_s28 }
 0x21f   : > { %895 = vset.pattern.permute.xlu0 %v1018_v30 }
 0x221   : > { %466 = vperm.xlu1 %891, %v1168_v1  }
 0x225   : > { %893 = vset.pattern.permute.xlu1 %v1017_v29 }
 0x226   : > { %595 = vperm.xlu1 %893, %v1168_v1  }
 0x22a   : > { %894 = vset.pattern.permute.xlu1 %v1018_v30 }
 0x22b   : > { %674 = vperm.xlu1 %894, %v1168_v1  }
 0x289   : > { %v453_v24 = vpop.permute.xlu0 %452 }
 0x28b   : > { %v888_v16 = vpop.permute.xlu1 %887 }
 0x28c   : > { %v890_v17 = vunpack.i.h.bf16 %v888_v16  ;;  %v889_v18 = vunpack.i.l.bf16 %v888_v16 }
 0x28e   : > { %v442_v19 = vsel %vm328_vm10, %v889_v18, %v890_v17  ;;  %v443_v20 = vsel %vm328_vm10, %v890_v17, %v889_v18  ;;  %v593_v17 = vld [vmem:[%s1278_s3] sm:$0xff] }
 0x28f   : > { %v451_v21 = vpop.permute.xlu1 %450  ;;  %v811_v22 = vpack.c.bf16 %v436_v12, %v442_v19  ;;  %v813_v23 = vpack.c.bf16 %v434_v10, %v443_v20 }
 0x290   : > { %v456_v25 = vsel %vm454_vm12, %v453_v24, %v451_v21  ;;  %v455_v27 = vsel %vm454_vm12, %v451_v21, %v453_v24 }
 0x291   : > { %812 = vmatprep.subr.bf16.mxu1 %v811_v22 }
 0x292   : > { %815 = vmatpush1.bf16.msk.msra.mxu1 %vm814_vm13, %v813_v23 }
 0x293   : > { %789 = vmatprep.subr.msk.mxu1 %vm804_vm14, %v456_v25 }
 0x296   : > { %485 = vmatpush1.msra.mxu1 %v455_v27 }
 0x297   : > { %790 = vmatmul.mubr.msk.f32.vlgmr.msra.gmra.mrb[0].mxu1 %vm363_vm9, %v463_v26 }
 0x298   : > { %550 = vmatprep.mubr.f32.mxu1 %v1009_v49 }
 0x29a   : > { %v472_v36 = vpop.permute.xlu0 %471 }
 0x29b   : > { %791 = vmatmul.mubr.msk.f32.gmra.mrb[2].mxu1 %vm363_vm9, %v464_v28 }
 0x2a0   : > { %v467_v31 = vpop.permute.xlu1 %466 }
 0x2a5   : > { %v596_v18 = vpop.permute.xlu1 %595 }
 0x2aa   : > { %v675_v20 = vpop.permute.xlu1 %674 }
 0x36a   : > { %v546_v32 = vpop.f32.mrb[0].mxu1 }
 0x36b   : > { %v547_v33 = vadd.f32 %v546_v32, %v467_v31  ;;  %v548_v34 = vpop.f32.mrb[1].mxu1 }
 0x36c   : > { %v549_v35 = vadd.f32 %v548_v34, %v467_v31 }
 0x36d   : > { %v557_v37 = vmul.f32 %v547_v33, %v547_v33 }
 0x36e   : > { %v558_v38 = vmul.f32 %v549_v35, %v549_v35  ;;  %v552_v39 = vpop.f32.mrb[2].mxu1 }
 0x36f   : > { %v561_v40 = vmul.f32 %v557_v37, %v547_v33  ;;  %v553_v41 = vadd.f32 %v552_v39, %v472_v36  ;;  %v554_v42 = vpop.f32.mrb[3].mxu1 }
 0x370   : > { %v562_v43 = vmul.f32 %v558_v38, %v549_v35  ;;  %v555_v44 = vadd.f32 %v554_v42, %v472_v36 }
 0x371   : > { %v565_v45 = vmul.f32 0.044715, %v561_v40  ;;  %v559_v46 = vmul.f32 %v553_v41, %v553_v41 }
 0x372   : > { %v566_v47 = vmul.f32 0.044715, %v562_v43  ;;  %v560_v48 = vmul.f32 %v555_v44, %v555_v44 }
 0x373   : > { %v569_v49 = vadd.f32 %v565_v45, %v547_v33  ;;  %v563_v1 = vmul.f32 %v559_v46, %v553_v41 }
 0x374   : > { %v570_v50 = vadd.f32 %v566_v47, %v549_v35  ;;  %v564_v51 = vmul.f32 %v560_v48, %v555_v44 }
 0x375   : > { %v573_v52 = vmul.f32 0.7978846, %v569_v49  ;;  %v567_v53 = vmul.f32 0.044715, %v563_v1 }
 0x376   : > { %v574_v54 = vmul.f32 0.7978846, %v570_v50  ;;  %v568_v55 = vmul.f32 0.044715, %v564_v51 }
 0x377   : > { %900 = vtanh.f32 %v573_v52  ;;  %v571_v56 = vadd.f32 %v567_v53, %v553_v41 }
 0x378   : > { %902 = vtanh.f32 %v574_v54  ;;  %v572_v57 = vadd.f32 %v568_v55, %v555_v44 }
 0x379   : > { %v575_v58 = vmul.f32 0.7978846, %v571_v56 }
 0x37a   : > { %v576_v59 = vmul.f32 0.7978846, %v572_v57 }
 0x37b   : > { %904 = vtanh.f32 %v575_v58 }
 0x37c   : > { %906 = vtanh.f32 %v576_v59 }
 0x381   : > { %v901_v60 = vpop.eup %900 }
 0x382   : > { %v903_v61 = vpop.eup %902  ;;  %v581_v62 = vadd.f32 1.0, %v901_v60 }
 0x383   : > { %v582_v63 = vadd.f32 1.0, %v903_v61 }
 0x384   : > { %v585_v5 = vmul.f32 0.5, %v581_v62 }
 0x385   : > { %v905_v0 = vpop.eup %904  ;;  %v586_v8 = vmul.f32 0.5, %v582_v63 }
 0x386   : > { %v907_v2 = vpop.eup %906  ;;  %v583_v6 = vadd.f32 1.0, %v905_v0  ;;  %v589_v11 = vmul.f32 %v585_v5, %v547_v33 }
 0x387   : > { %v584_v7 = vadd.f32 1.0, %v907_v2  ;;  %v590_v13 = vmul.f32 %v586_v8, %v549_v35 }
 0x388   : > { %v587_v9 = vmul.f32 0.5, %v583_v6 }
 0x389   : > { %v588_v10 = vmul.f32 0.5, %v584_v7 }
 0x38a   : > { %v591_v12 = vmul.f32 %v587_v9, %v553_v41 }
 0x38b   : > { %v592_v14 = vmul.f32 %v588_v10, %v555_v44 }
 0x38c   : > { %v818_v15 = vpack.c.bf16 %v591_v12, %v589_v11 }
 0x38d   : > { %v816_v16 = vpack.c.bf16 %v592_v14, %v590_v13 }
 0x38f   : > { %817 = vmatprep.subr.bf16.mxu0 %v816_v16 }
 0x390   : > { %819 = vmatpush1.bf16.msra.mxu0 %v818_v15 }
 0x393   : > { %792 = vmatmul.mubr.msk.f32.vlgmr.msra.gmra.mrb[2].mxu0 %vm598_vm15, %v593_v17 }
 0x466   : > { %v668_v19 = vpop.f32.mrb[2].mxu0 }
 0x467   : > { %v669_v21 = vadd.f32 %v668_v19, %v596_v18  ;;  %v670_v22 = vpop.f32.mrb[3].mxu0 }
 0x468   : > { %v671_v23 = vadd.f32 %v670_v22, %v596_v18 }
 0x469   : > { %v677_v24 = vmul.f32 %v675_v20, %v669_v21 }
 0x46a   : > { %v678_v25 = vmul.f32 %v675_v20, %v671_v23 }
 0x46b   : > { %v679_v26 = vadd.f32 %v677_v24, %v1172_v3 }
 0x46c   : > { %v680_v27 = vadd.f32 %v678_v25, %v1174_v4 }
 0x46d   : > { %681 = vst [vmem:[%s240_s16] sm:$0xff] %v679_v26 }
 0x46e   : > { %682 = vst [vmem:[%s240_s16 + $0x8] sm:$0xff] %v680_v27 }
 0x46f   : > { %951 = shalt.err (!%p948_p4)
}
 0x470   : > { %s952_s13 = scalar_lea.hbm %s1231_s8, 256  ;;  %s956_s15 = scalar_lea.hbm %s1280_s5, 512 }
 0x471   : > { %p953_p5 = scmp.ne.s32.totalorder %s1231_s8, %s952_s13  ;;  %p957_p0 = scmp.lt.u32.totalorder %s1231_s8, %s1280_s5 }
 0x472   : > { %p958_p1 = scmp.lt.u32.totalorder %s956_s15, %s952_s13  ;;  %p960_p6 = scmp.lt.u32.totalorder %s952_s13, %s1231_s8 }
 0x473   : > { %p954_p8 = pnand %p953_p5, %p1289_p11 }
 0x474   : > { %p959_p3 = por %p958_p1, %p957_p0 }
 0x475   : > { %p955_p9 = pneg %p954_p8 }
 0x476   : > { %p961_p12 = por %p960_p6, %p959_p3 }
 0x478   : > { %p962_p13 = pnand %p961_p12, %p955_p9 }
 0x47a   : > { %965 = shalt.err (!%p962_p13)
}
 0x47b   : > { %822 = dma.vmem_to_hbm [thread:$0]  (%p1289_p11), %s1233_s25, 256, %s1231_s8, %s684_s22  }
 0x47c PF: > { %s710_s29 = sand.u32 1, %s992_s18   ;;  %p1290_p7 = scmp.ne.s32.totalorder %s1285_s6, 0 }
 0x47d   : > { %p1291_p10 = scmp.ge.s32.totalorder %s1004_s21, 2  ;;  %s711_s16 = scalar_lea.sflag [#allocation4], %s710_s29 }
 0x47f   : > { %p829_p2 = pnand %p1291_p10, %p1290_p7 }
 0x481   : > { %987 = dma.done.wait (!%p829_p2), %s711_s16, 256  }
 0x482   : > { %989 = vsyncadd (!%p829_p2), %s711_s16, 4294967040  ;;  %p18_p4 = scmp.ge.s32.totalorder %s1075_s24, 4   ;;  %s1292_s18 = smov %s996_s19 }
 0x483   : > { %s1293_s19 = smov %s1000_s20  ;;  %s1294_s20 = smov %s1087_s27 }
 0x484   : > { %s1295_s21 = smov %s1075_s24  ;;  %20 = sbr.rel (!%p18_p4) target bundleno = 5 (0x5), region = 85 }
 0x48b   :  { %716 = vsyncpa [#allocation3], 1 }
 0x48c   :  { %718 = vsyncpa [#allocation3 + $0x1], 1 }
 0x48d   :  { %719 = vsyncpa [#allocation4], 1 }
 0x48e   :  { %721 = vsyncpa [#allocation4 + $0x1], 1 }

</bundles_post_ra>
